<compile_context>
chip_gen: v7x
topology: tpu7x:2x2x1
jax: 0.10.0
libtpu: 0.0.40
codegen_flags: <defaults>
</compile_context>

<pallas_src>
import math

import jax
import jax.numpy as jnp
from jax.experimental import pallas as pl
from jax.experimental.pallas import tpu as pltpu


def _cdiv(a, b):
    return -(-a // b)


def _minmax_kernel(x_ref, mn_ref, inv_ref, o_ref):
    # Elementwise hot path: broadcast the (1, tile_f) f32 param rows against
    # the (tile_n, tile_f) tile.  Compute in f32, cast once on the store.
    x = x_ref[...].astype(jnp.float32)
    o_ref[...] = ((x - mn_ref[...]) * inv_ref[...]).astype(o_ref.dtype)


def minmax_scaler_forward(
    x,
    mn,
    mx,
    *,
    target_block_bytes=2 * 1024 * 1024,   # safe under v5e's 16 MiB scoped VMEM
    small_fallback_bytes=1 * 1024 * 1024,  # below this, let XLA fuse it
    min_grid_tiles=4,                      # keep both v7x TCs busy + pipeline
    alias_input=False,                     # opt-in: reuse x's buffer for out
    guard_constant_columns=False,          # opt-in: mx == mn -> output 0
):
    """Apply (x - mn) / (mx - mn) with per-column mn/mx over the last axis."""
    F = x.shape[-1]
    orig_shape = x.shape
    x2d = x.reshape(-1, F)
    N = x2d.shape[0]

    in_dtype = x.dtype
    # Integer inputs would truncate the [0, 1] result; promote to f32.
    out_dtype = in_dtype if jnp.issubdtype(in_dtype, jnp.floating) else jnp.float32

    # Per-column offset/scale once, in f32, in the wrapper (O(F)).
    mn_f32 = mn.astype(jnp.float32).reshape(F)
    rng_f32 = mx.astype(jnp.float32).reshape(F) - mn_f32
    if guard_constant_columns:
        inv_f32 = jnp.where(rng_f32 != 0.0, 1.0 / rng_f32, 0.0)
    else:
        # Matches the naive PyTorch forward: constant columns give inf/nan.
        inv_f32 = 1.0 / rng_f32

    in_bytes = jnp.dtype(in_dtype).itemsize
    out_bytes = jnp.dtype(out_dtype).itemsize

    # ---- Small-shape fallback: dispatch + per-step overhead would dominate.
    if N * F * max(in_bytes, out_bytes) <= small_fallback_bytes:
        out = ((x2d.astype(jnp.float32) - mn_f32[None, :]) * inv_f32[None, :]).astype(out_dtype)
        return out.reshape(orig_shape)

    packing = max(1, 4 // min(in_bytes, out_bytes))  # 1 f32, 2 bf16, 4 int8/fp8
    sublane = 8 * packing

    # ---- Lane-dense row folding (generalized): k*F is a multiple of 128. ----
    k = 1
    if F % 128 != 0:
        kk = 128 // math.gcd(F, 128)
        if kk > 1 and N % kk == 0:
            k = kk
    # TODO(synk): when N % k != 0 we fall back to masked (vst.msk) stores
    # instead of padding N/F — padding would materialize an extra HBM copy of x
    # through the custom-call boundary, which costs more than masking saves.
    N_eff, F_eff = N // k, F * k
    x_eff = x2d.reshape(N_eff, F_eff) if k > 1 else x2d
    mn_row = (jnp.tile(mn_f32, k) if k > 1 else mn_f32).reshape(1, F_eff)
    inv_row = (jnp.tile(inv_f32, k) if k > 1 else inv_f32).reshape(1, F_eff)

    # ---- Feature tiling: only when lane-aligned and very wide. --------------
    if F_eff % 128 == 0:
        tile_f = min(F_eff, 4096)
    else:
        # Full-dim last axis is always a legal block dim; stores are masked.
        tile_f = F_eff
        # TODO(synk): an extremely wide non-128-aligned F could push a single
        # sublane-row block past the VMEM budget; not handled here.
    grid_f = _cdiv(F_eff, tile_f)

    # ---- Row tiling: ~target_block_bytes per block, sublane aligned. --------
    bytes_per_row = tile_f * max(in_bytes, out_bytes)
    rows_budget = max(1, target_block_bytes // bytes_per_row)
    tile_n = max(sublane, (rows_budget // sublane) * sublane)
    if tile_n >= N_eff:
        tile_n = N_eff  # full dim is always legal
    grid_n = _cdiv(N_eff, tile_n)

    # Guarantee enough grid steps for software pipelining and for the
    # "parallel" axis to shard across both v7x TensorCores.
    if grid_n * grid_f < min_grid_tiles and N_eff >= min_grid_tiles * sublane:
        tile_n = min(tile_n, max(sublane, (N_eff // min_grid_tiles) // sublane * sublane))
        grid_n = _cdiv(N_eff, tile_n)

    cost = pl.CostEstimate(
        flops=2 * N * F,
        transcendentals=0,
        bytes_accessed=N * F * (in_bytes + out_bytes) + grid_n * F_eff * 2 * 4,
    )

    if grid_f == 1:
        grid = (grid_n,)
        in_specs = [
            pl.BlockSpec((tile_n, tile_f), lambda i: (i, 0)),   # x row tile
            pl.BlockSpec((1, tile_f), lambda i: (0, 0)),        # min (f32), resident
            pl.BlockSpec((1, tile_f), lambda i: (0, 0)),        # 1/(max-min), resident
        ]
        out_specs = pl.BlockSpec((tile_n, tile_f), lambda i: (i, 0))
        dims = ("parallel",)
    else:
        grid = (grid_n, grid_f)
        in_specs = [
            pl.BlockSpec((tile_n, tile_f), lambda i, j: (i, j)),
            pl.BlockSpec((1, tile_f), lambda i, j: (0, j)),
            pl.BlockSpec((1, tile_f), lambda i, j: (0, j)),
        ]
        out_specs = pl.BlockSpec((tile_n, tile_f), lambda i, j: (i, j))
        dims = ("parallel", "parallel")

    aliases = {}
    if alias_input and out_dtype == in_dtype:
        # x_eff is operand 0 in this call order; reuse its buffer for output 0.
        aliases = {0: 0}

    out = pl.pallas_call(
        _minmax_kernel,
        out_shape=jax.ShapeDtypeStruct((N_eff, F_eff), out_dtype),
        grid_spec=pltpu.PrefetchScalarGridSpec(
            num_scalar_prefetch=0,
            grid=grid,
            in_specs=in_specs,
            out_specs=out_specs,
        ),
        compiler_params=pltpu.CompilerParams(dimension_semantics=dims),
        cost_estimate=cost,
        input_output_aliases=aliases,
    )(x_eff, mn_row, inv_row)

    return out.reshape(orig_shape)


if __name__ == "__main__":
    key = jax.random.PRNGKey(0)
    k1, k2, k3, k4 = jax.random.split(key, 4)

    def ref_fn(x, mn, mx):
        out_dt = x.dtype if jnp.issubdtype(x.dtype, jnp.floating) else jnp.float32
        return ((x.astype(jnp.float32) - mn[None, :]) / (mx - mn)[None, :]).astype(out_dt)

    # Case 1: tiny shape consistent with the module (N=8 rows, F=32 columns)
    # -> fused-XLA small-shape fallback path.
    N1, F1 = 8, 32
    x1 = jax.random.normal(k1, (N1, F1), dtype=jnp.float32) * 3.0 + 1.0
    mn1 = jnp.linspace(-2.0, 0.5, F1, dtype=jnp.float32)
    mx1 = mn1 + jnp.linspace(1.0, 4.0, F1, dtype=jnp.float32)
    out1 = jax.block_until_ready(minmax_scaler_forward(x1, mn1, mx1))
    assert out1.shape == x1.shape and out1.dtype == x1.dtype
    assert jnp.allclose(out1, ref_fn(x1, mn1, mx1), atol=1e-5, rtol=1e-5)

    # Case 2: F=96 (not 128-aligned), N divisible by k=4 -> generalized
    # lane-dense row-fold path ((256,96) -> (64,384)), 4 parallel row tiles.
    N2, F2 = 256, 96
    x2 = jax.random.normal(k2, (N2, F2), dtype=jnp.float32) * 2.0 - 0.5
    mn2 = jnp.linspace(-1.0, 0.25, F2, dtype=jnp.float32)
    mx2 = mn2 + jnp.linspace(0.5, 2.0, F2, dtype=jnp.float32)
    out2 = jax.block_until_ready(
        minmax_scaler_forward(x2, mn2, mx2, small_fallback_bytes=0))
    assert out2.shape == x2.shape and out2.dtype == x2.dtype
    assert jnp.allclose(out2, ref_fn(x2, mn2, mx2), atol=1e-5, rtol=1e-5)

    # Case 3: 128-aligned F, N not a multiple of the tile -> cdiv grid with a
    # partial (masked) edge row tile.
    N3, F3 = 250, 384
    x3 = jax.random.normal(k3, (N3, F3), dtype=jnp.float32) * 1.5 + 0.3
    mn3 = jnp.linspace(-0.5, 0.5, F3, dtype=jnp.float32)
    mx3 = mn3 + jnp.linspace(1.0, 3.0, F3, dtype=jnp.float32)
    out3 = jax.block_until_ready(
        minmax_scaler_forward(x3, mn3, mx3, small_fallback_bytes=0))
    assert out3.shape == x3.shape and out3.dtype == x3.dtype
    assert jnp.allclose(out3, ref_fn(x3, mn3, mx3), atol=1e-5, rtol=1e-5)

    # Case 4: bf16 input, 128-aligned F -> packed-sublane (multiple of 16) tiles.
    N4, F4 = 128, 256
    x4 = (jax.random.normal(k4, (N4, F4), dtype=jnp.float32) * 2.0).astype(jnp.bfloat16)
    mn4 = jnp.linspace(-1.0, 0.0, F4, dtype=jnp.float32)
    mx4 = mn4 + jnp.linspace(0.5, 2.5, F4, dtype=jnp.float32)
    out4 = jax.block_until_ready(
        minmax_scaler_forward(x4, mn4, mx4, small_fallback_bytes=0))
    assert out4.shape == x4.shape and out4.dtype == x4.dtype
    assert jnp.allclose(out4.astype(jnp.float32),
                        ref_fn(x4, mn4, mx4).astype(jnp.float32),
                        atol=2e-2, rtol=2e-2)

    print("KERNEL_OK")
</pallas_src>

<mosaic_0001>
module attributes {stable_mosaic.version = 11 : i64} {
  func.func @_minmax_kernel(%arg0: i32, %arg1: memref<16x384xf32, #tpu.memory_space<vmem>>, %arg2: memref<1x384xf32, #tpu.memory_space<vmem>>, %arg3: memref<1x384xf32, #tpu.memory_space<vmem>>, %arg4: memref<16x384xf32, #tpu.memory_space<vmem>>) attributes {dimension_semantics = [#tpu.dimension_semantics<parallel>], iteration_bounds = array<i64: 4>, scalar_prefetch = 0 : i64, scratch_operands = 0 : i64, tpu.core_type = #tpu.core_type<tc>, window_params = [{transform_indices = @transform_0, window_bounds = array<i64: 16, 384>}, {pipeline_mode = #tpu.pipeline_mode<synchronous>, transform_indices = @transform_1, window_bounds = array<i64: 1, 384>}, {pipeline_mode = #tpu.pipeline_mode<synchronous>, transform_indices = @transform_2, window_bounds = array<i64: 1, 384>}, {transform_indices = @transform_3, window_bounds = array<i64: 16, 384>}]} {
    %c0 = arith.constant 0 : index
    %c0_0 = arith.constant 0 : index
    %0 = vector.load %arg1[%c0, %c0_0] : memref<16x384xf32, #tpu.memory_space<vmem>>, vector<16x384xf32>
    %c0_1 = arith.constant 0 : index
    %c0_2 = arith.constant 0 : index
    %1 = vector.load %arg2[%c0_1, %c0_2] : memref<1x384xf32, #tpu.memory_space<vmem>>, vector<1x384xf32>
    %2 = vector.broadcast %1 : vector<1x384xf32> to vector<16x384xf32>
    %3 = arith.subf %0, %2 : vector<16x384xf32>
    %c0_3 = arith.constant 0 : index
    %c0_4 = arith.constant 0 : index
    %4 = vector.load %arg3[%c0_3, %c0_4] : memref<1x384xf32, #tpu.memory_space<vmem>>, vector<1x384xf32>
    %5 = vector.broadcast %4 : vector<1x384xf32> to vector<16x384xf32>
    %6 = arith.mulf %3, %5 : vector<16x384xf32>
    %c0_5 = arith.constant 0 : index
    %c0_6 = arith.constant 0 : index
    %7 = vector.load %arg4[%c0_5, %c0_6] : memref<16x384xf32, #tpu.memory_space<vmem>>, vector<16x384xf32>
    tpu.vector_store %arg4[%c0_5, %c0_6], %6 {strides = array<i32>} : memref<16x384xf32, #tpu.memory_space<vmem>>, vector<16x384xf32>,
    return
  }
  func.func @transform_0(%arg0: i32) -> (i32, i32) {
    %c0_i32 = arith.constant 0 : i32
    %c0_i32_0 = arith.constant 0 : i32
    return %arg0, %c0_i32 : i32, i32
  }
  func.func @transform_1(%arg0: i32) -> (i32, i32) {
    %c0_i32 = arith.constant 0 : i32
    %c0_i32_0 = arith.constant 0 : i32
    %c0_i32_1 = arith.constant 0 : i32
    return %c0_i32, %c0_i32_0 : i32, i32
  }
  func.func @transform_2(%arg0: i32) -> (i32, i32) {
    %c0_i32 = arith.constant 0 : i32
    %c0_i32_0 = arith.constant 0 : i32
    %c0_i32_1 = arith.constant 0 : i32
    return %c0_i32, %c0_i32_0 : i32, i32
  }
  func.func @transform_3(%arg0: i32) -> (i32, i32) {
    %c0_i32 = arith.constant 0 : i32
    %c0_i32_0 = arith.constant 0 : i32
    return %arg0, %c0_i32 : i32, i32
  }
}

</mosaic_0001>

<bundles_post_ra>
// kernel: tpu_custom_call.1
= control target key start
LH: loop header
LB: loop body
LE: loop exit
PB: predicated region body
PF: predicated region fallthrough
CT: control target
= control target key end

     0   :  { %8 = vsyncpa [#allocation3], 0  ;;  %s688_s0 = inlined_call_operand.hbm [shape: f32[64,384], index: 0, kind: input, shape index: {}]   ;;  %s689_s1 = inlined_call_operand.vmem [shape: f32[1,384], index: 1, kind: input, shape index: {}]   ;;  %s690_s2 = inlined_call_operand.vmem [shape: f32[1,384], index: 2, kind: input, shape index: {}]   ;;  %s691_s3 = inlined_call_operand.hbm [shape: f32[64,384], index: 3, kind: output, shape index: {}]  }
   0x1   :  { %10 = vsyncpa [#allocation3 + $0x1], 0 }
   0x2   :  { %11 = vsyncpa [#allocation4], 0 }
   0x3   :  { %13 = vsyncpa [#allocation4 + $0x1], 0  ;;  %s528_s12 = smov 0   ;;  %s530_s13 = smov 0  }
   0x4   :  { %s532_s14 = smov 0   ;;  %s534_s15 = smov 0  }
   0x5 LB: > { %s549_s16 = sadd.s32 4294967295, %s500_s15   ;;  %s338_s17 = sadd.s32 4294967294, %s500_s15   ;;  %s500_s15 = sphi %s534_s15, %s702_s15   ;;  %s496_s14 = sphi %s532_s14, %s701_s14   ;;  %s492_s13 = sphi %s530_s13, %s700_s13   ;;  %s488_s12 = sphi %s528_s12, %s699_s12  }
   0x6   : > { %s553_s18 = sadd.s32 1, %s500_s15   ;;  %s26_s19 = sadd.s32 1, %s496_s14 }
   0x7   : > { %s23_s20 = ssub.s32 %s500_s15, %s553_s18  ;;  %p33_p0 = scmp.ne.s32.totalorder %s496_s14, %s492_s13 }
   0x8   : > { %p24_p1 = scmp.eq.s32.totalorder %s23_s20, 0  ;;  %p34_p2 = scmp.eq.s32.totalorder %s500_s15, 0 }
   0x9   : > { %p39_p3 = scmp.ne.s32.totalorder %s492_s13, %s488_s12  ;;  %p40_p4 = scmp.eq.s32.totalorder %s549_s16, 0 }
   0xa   : > { %s565_s21 = scalar_select %p24_p1, %s496_s14, %s26_s19  }
   0xb   : > { %p35_p5 = por %p34_p2, %p33_p0  ;;  %p567_p6 = por %p40_p4, %p39_p3 }
   0xc   : > { %p105_p7 = scmp.eq.s32.totalorder %s549_s16, 3  ;;  %p111_p8 = scmp.eq.s32.totalorder %s338_s17, 3 }
   0xd   : > { %p366_p9 = scmp.lt.s32.totalorder %s500_s15, 4  ;;  %s137_s25 = sand.u32 1, %s496_s14  }
   0xe   : > { %p573_p10 = por %p105_p7, %p33_p0  ;;  %p577_p11 = por %p111_p8, %p39_p3 }
   0xf   : > { %s351_s26 = smul.u32 768, %s500_s15  ;;  %p588_p12 = pnand %p366_p9, %p35_p5 }
  0x10   : > { %s694_s23 = scalar_select %p573_p10, 1, 0 }
  0x11   : > { %s695_s24 = scalar_select %p577_p11, 1, 0 }
  0x12   : > { %s350_s27 = smul.u32 48, %s137_s25  ;;  %s586_s30 = scalar_lea.hbm %s688_s0, %s351_s26 }
  0x13   : > { %s594_s7 = scalar_lea.sflag [#allocation3], %s137_s25  ;;  %s404_s8 = scalar_lea.hbm %s586_s30, 768 }
  0x14   : > { %s141_s5 = scalar_lea.vmem [#allocation2], %s350_s27  ;;  %p405_p13 = scmp.ne.s32.totalorder %s586_s30, %s404_s8 }
  0x15   : > { %s149_s6 = sshll.u32 %s141_s5, 4  ;;  %p406_p0 = pneg %p588_p12  ;;  %s592_s6 = int_to_ptr.vmem [resolvable:$true] %s149_s6 }
  0x16   : > { %s409_s11 = scalar_lea.hbm %s688_s0, 3072  ;;  %p410_p3 = scmp.lt.u32.totalorder %s586_s30, %s688_s0 }
  0x17   : > { %p407_p1 = pnand %p406_p0, %p405_p13  ;;  %p411_p4 = scmp.lt.u32.totalorder %s409_s11, %s404_s8 }
  0x18   : > { %p413_p7 = scmp.lt.u32.totalorder %s404_s8, %s586_s30 }
  0x19   : > { %p408_p2 = pneg %p407_p1  ;;  %p412_p5 = por %p411_p4, %p410_p3 }
  0x1b   : > { %p414_p8 = por %p413_p7, %p412_p5 }
  0x1d   : > { %p415_p9 = pnand %p414_p8, %p408_p2 }
  0x1f   : > { %418 = shalt.err (!%p415_p9)
}
  0x20   : > { %s419_s20 = scalar_lea.vmem %s592_s6, 768  ;;  %s502_s25 = smov [#allocation2]  }
  0x21   : > { %p420_p13 = scmp.ne.s32.totalorder %s592_s6, %s419_s20  ;;  %s424_s26 = sshll.u32 %s502_s25, 4  ;;  %s425_s26 = int_to_ptr.vmem [resolvable:$false] %s424_s26 }
  0x22   : > { %s426_s27 = scalar_lea.vmem %s425_s26, 1536  ;;  %p427_p10 = scmp.lt.s32.totalorder %s592_s6, %s425_s26 }
  0x23   : > { %p422_p1 = pnand %p420_p13, %p406_p0  ;;  %p428_p3 = scmp.lt.s32.totalorder %s426_s27, %s419_s20 }
  0x25   : > { %p423_p11 = pneg %p422_p1  ;;  %p429_p4 = por %p428_p3, %p427_p10 }
  0x27   : > { %p430_p5 = pnand %p429_p4, %p423_p11 }
  0x29   : > { %433 = shalt.err (!%p430_p5)
}
  0x2a   : > { %s503_s28 = smov 384   ;;  %s504_s29 = smov 24  }
  0x2b   : > { %361 = dma.hbm_to_vmem [thread:$0]  (!%p588_p12), %s586_s30, 768, %s592_s6, %s594_s7, %s503_s28, %s503_s28, %s504_s29  }
  0x2c   : > { %p344_p0 = scmp.ge.s32.totalorder %s500_s15, 1  ;;  %p157_p2 = scmp.lt.s32.totalorder %s500_s15, 5 }
  0x2e   : > { %p158_p7 = pnand %p344_p0, %p157_p2 }
  0x2f   : > { %s625_s5 = sand.u32 (!%p158_p7), 1, %s492_s13  }
  0x30   : > { %161 = sbr.rel (%p158_p7) target bundleno = 85 (0x55), region = 32  ;;  %s164_s9 = scalar_lea.sflag (!%p158_p7), [#allocation3], %s625_s5 }
  0x31   : > { %s352_s8 = smul.u32 (!%p158_p7), 48, %s625_s5 }
  0x33   : > { %s167_s10 = scalar_lea.vmem (!%p158_p7), [#allocation2], %s352_s8 }
  0x37   : > { %479 = dma.done.wait (%p567_p6), %s164_s9, 768  }
  0x38   : > { %481 = vsyncadd (%p567_p6), %s164_s9, 4294966528  ;;  %v200_v0 = vlaneseq  ;;  %v192_v5 = vld [vmem:[%s167_s10] sm:$0xff]  ;;  %v193_v10 = vld [vmem:[%s167_s10 + $0x8] sm:$0xff]  ;;  %s189_s22 = scalar_lea.vmem [#allocation5], %s352_s8  ;;  %s353_s17 = smul.u32 768, %s549_s16 }
  0x39   : > { %v198_v6 = vld [vmem:[%s689_s1] sm:$0x7]  ;;  %v195_v14 = vld [vmem:[%s167_s10 + $0x18] sm:$0xff]  ;;  %s265_s11 = sshll.u32 %s189_s22, 4  ;;  %v197_v18 = vld [vmem:[%s167_s10 + $0x28] sm:$0xff]  ;;  %s251_s25 = scalar_lea.sflag [#allocation4], %s625_s5  ;;  %s640_s11 = int_to_ptr.vmem [resolvable:$true] %s265_s11 }
  0x3a   : > { %v201_v1 = vshrl.u32 %v200_v0, 7  ;;  %v221_v7 = vld [vmem:[%s690_s2] sm:$0x7]  ;;  %s645_s20 = scalar_lea.hbm %s691_s3, %s353_s17  ;;  %s434_s26 = scalar_lea.vmem %s640_s11, 768 }
  0x3b   : > { %v194_v13 = vld [vmem:[%s167_s10 + $0x10] sm:$0xff]  ;;  %v196_v17 = vld [vmem:[%s167_s10 + $0x20] sm:$0xff]  ;;  %p435_p6 = scmp.ne.s32.totalorder %s640_s11, %s434_s26  ;;  %p697_p10 = scmp.ne.s32.totalorder %s694_s23, 0 }
  0x3c   : > { %v202_v2 = vsub.s32 0, %v201_v1  ;;  %v206_v3 = vsub.s32 1, %v201_v1  ;;  %v210_v4 = vsub.s32 2, %v201_v1  ;;  %s505_s27 = smov [#allocation5]  }
  0x3d   : > { %p436_p11 = pnand %p435_p6, %p697_p10  ;;  %s438_s28 = sshll.u32 %s505_s27, 4  ;;  %s439_s28 = int_to_ptr.vmem [resolvable:$false] %s438_s28 }
  0x3e   : > { %v203_v8 = vrot.slane %v198_v6, %v202_v2  ;;  %v226_v9 = vrot.slane %v221_v7, %v202_v2  ;;  %v207_v11 = vrot.slane %v198_v6, %v206_v3  ;;  %v230_v12 = vrot.slane %v221_v7, %v206_v3  ;;  %s440_s29 = scalar_lea.vmem %s439_s28, 1536  ;;  %p441_p8 = scmp.lt.s32.totalorder %s640_s11, %s439_s28 }
  0x3f   : > { %v211_v15 = vrot.slane %v198_v6, %v210_v4  ;;  %v234_v16 = vrot.slane %v221_v7, %v210_v4  ;;  %p437_p12 = pneg %p436_p11  ;;  %p442_p9 = scmp.lt.s32.totalorder %s440_s29, %s434_s26 }
  0x40   : > { %v215_v19 = vsub.f32 %v192_v5, %v203_v8  ;;  %v216_v20 = vsub.f32 %v193_v10, %v207_v11  ;;  %v218_v21 = vsub.f32 %v195_v14, %v203_v8  ;;  %v219_v22 = vsub.f32 %v196_v17, %v207_v11 }
  0x41   : > { %v217_v23 = vsub.f32 %v194_v13, %v211_v15  ;;  %v220_v24 = vsub.f32 %v197_v18, %v211_v15  ;;  %p443_p13 = por %p442_p9, %p441_p8 }
  0x42   : > { %v238_v25 = vmul.f32 %v226_v9, %v215_v19  ;;  %v239_v26 = vmul.f32 %v230_v12, %v216_v20  ;;  %v241_v27 = vmul.f32 %v226_v9, %v218_v21  ;;  %v242_v28 = vmul.f32 %v230_v12, %v219_v22 }
  0x43   : > { %v240_v29 = vmul.f32 %v234_v16, %v217_v23  ;;  %v243_v30 = vmul.f32 %v234_v16, %v220_v24  ;;  %p444_p1 = pnand %p443_p13, %p437_p12 }
  0x44   : > { %244 = vst [vmem:[%s189_s22] sm:$0xff] %v238_v25  ;;  %245 = vst [vmem:[%s189_s22 + $0x8] sm:$0xff] %v239_v26 }
  0x45   : > { %247 = vst [vmem:[%s189_s22 + $0x18] sm:$0xff] %v241_v27  ;;  %248 = vst [vmem:[%s189_s22 + $0x20] sm:$0xff] %v242_v28 }
  0x46   : > { %246 = vst [vmem:[%s189_s22 + $0x10] sm:$0xff] %v240_v29  ;;  %249 = vst [vmem:[%s189_s22 + $0x28] sm:$0xff] %v243_v30 }
  0x47   : > { %447 = shalt.err (!%p444_p1)
}
  0x48   : > { %s448_s8 = scalar_lea.hbm %s645_s20, 768  ;;  %s452_s30 = scalar_lea.hbm %s691_s3, 3072 }
  0x49   : > { %p449_p3 = scmp.ne.s32.totalorder %s645_s20, %s448_s8  ;;  %p453_p0 = scmp.lt.u32.totalorder %s645_s20, %s691_s3 }
  0x4a   : > { %p454_p2 = scmp.lt.u32.totalorder %s452_s30, %s448_s8  ;;  %p456_p6 = scmp.lt.u32.totalorder %s448_s8, %s645_s20 }
  0x4b   : > { %p450_p4 = pnand %p449_p3, %p697_p10 }
  0x4c   : > { %p455_p7 = por %p454_p2, %p453_p0 }
  0x4d   : > { %p451_p5 = pneg %p450_p4 }
  0x4e   : > { %p457_p11 = por %p456_p6, %p455_p7 }
  0x50   : > { %p458_p12 = pnand %p457_p11, %p451_p5 }
  0x52   : > { %461 = shalt.err (!%p458_p12)
}
  0x53   : > { %s506_s7 = smov 384   ;;  %s507_s22 = smov 24  }
  0x54   : > { %356 = dma.vmem_to_hbm [thread:$0]  (%p697_p10), %s640_s11, 768, %s645_s20, %s251_s25, %s506_s7, %s506_s7, %s507_s22  }
  0x55 PF: > { %p367_p8 = scmp.ge.s32.totalorder %s500_s15, 2  ;;  %s280_s17 = sand.u32 1, %s488_s12  }
  0x56   : > { %p698_p9 = scmp.ne.s32.totalorder %s695_s24, 0  ;;  %s281_s19 = scalar_lea.sflag [#allocation4], %s280_s17 }
  0x58   : > { %p363_p13 = pnand %p367_p8, %p698_p9 }
  0x5a   : > { %483 = dma.done.wait (!%p363_p13), %s281_s19, 768  }
  0x5b   : > { %485 = vsyncadd (!%p363_p13), %s281_s19, 4294966528  ;;  %p16_p1 = scmp.ge.s32.totalorder %s553_s18, 6   ;;  %s699_s12 = smov %s492_s13 }
  0x5c   : > { %s700_s13 = smov %s496_s14  ;;  %s701_s14 = smov %s565_s21 }
  0x5d   : > { %s702_s15 = smov %s553_s18  ;;  %18 = sbr.rel (!%p16_p1) target bundleno = 5 (0x5), region = 77 }
  0x64   :  { %286 = vsyncpa [#allocation3], 1 }
  0x65   :  { %288 = vsyncpa [#allocation3 + $0x1], 1 }
  0x66   :  { %289 = vsyncpa [#allocation4], 1 }
  0x67   :  { %291 = vsyncpa [#allocation4 + $0x1], 1 }

</bundles_post_ra>
